<compile_context>
chip_gen: v5e
topology: v5e:2x2
jax: 0.10.0
libtpu: 0.0.40
codegen_flags: <defaults>
</compile_context>

<pallas_src>
import jax
import jax.numpy as jnp
from jax.experimental import pallas as pl
from jax.experimental.pallas import tpu as pltpu


def _round_up(n, m):
    return ((n + m - 1) // m) * m


def mlp_kernel(x_ref, w1_ref, b1_ref, w2_ref, b2_ref, o_ref):
    # Layer 1: (tm, in) @ (in, mid) on the MXU, f32 accumulation, bias + ReLU.
    h = jnp.dot(x_ref[...], w1_ref[...], preferred_element_type=jnp.float32)
    h = jnp.maximum(h + b1_ref[...], 0.0)
    # Layer 2: (tm, mid) @ (mid, out_padded).
    o = jnp.dot(h.astype(w2_ref.dtype), w2_ref[...],
                preferred_element_type=jnp.float32)
    o_ref[...] = (o + b2_ref[...]).astype(o_ref.dtype)


def mlp_pallas(x, w1, b1, w2, b2, *, tm=256):
    """x: (..., in); w1: (in, mid); b1: (mid,); w2: (mid, out); b2: (out,)."""
    in_size = x.shape[-1]
    mid_size = w1.shape[1]
    out_size = w2.shape[1]
    lead = x.shape[:-1]

    x2 = x.reshape(-1, in_size)
    M = x2.shape[0]
    itemsize = x2.dtype.itemsize
    sublane = 32 // itemsize                     # 8 for f32, 16 for bf16, 32 for i8

    # Row tile: large (MXU-friendly) but never bigger than the padded M.
    tm_eff = min(_round_up(tm, sublane), _round_up(M, sublane))
    Mp = _round_up(M, tm_eff)
    if Mp != M:
        x2 = jnp.pad(x2, ((0, Mp - M), (0, 0)))

    # Lane-dense output: pad out dim to a multiple of 128 with zero W2 cols / b2.
    out_p = _round_up(out_size, 128)
    if out_p != out_size:
        w2 = jnp.pad(w2, ((0, 0), (0, out_p - out_size)))
        b2 = jnp.pad(b2, ((0, out_p - out_size),))

    b1_2 = b1.reshape(1, mid_size)
    b2_2 = b2.reshape(1, out_p)

    grid = (Mp // tm_eff,)

    # Scheduler hint.
    flops = 2 * Mp * (in_size * mid_size + mid_size * out_p)
    bytes_accessed = (x2.size * itemsize
                      + w1.size * w1.dtype.itemsize
                      + w2.size * w2.dtype.itemsize
                      + b1_2.size * b1_2.dtype.itemsize
                      + b2_2.size * b2_2.dtype.itemsize
                      + Mp * out_p * itemsize)
    cost = pl.CostEstimate(flops=flops, transcendentals=0,
                           bytes_accessed=bytes_accessed)

    # VMEM budget: resident weights (single copy) + double-buffered x/out tiles
    # + f32 intermediates. Only raise the scoped limit when it is needed.
    weight_bytes = (w1.size * w1.dtype.itemsize + w2.size * w2.dtype.itemsize
                    + b1_2.size * b1_2.dtype.itemsize
                    + b2_2.size * b2_2.dtype.itemsize)
    act_bytes = 2 * tm_eff * (in_size + out_p) * itemsize
    scratch_bytes = tm_eff * (mid_size + out_p) * 4
    est = weight_bytes + act_bytes + scratch_bytes
    cp_kwargs = dict(dimension_semantics=("parallel",))
    if est > 24 * 1024 * 1024:
        cp_kwargs["vmem_limit_bytes"] = int(est * 1.25)

    vmem = pltpu.MemorySpace.VMEM

    out = pl.pallas_call(
        mlp_kernel,
        out_shape=jax.ShapeDtypeStruct((Mp, out_p), x.dtype),
        grid_spec=pltpu.PrefetchScalarGridSpec(
            num_scalar_prefetch=0,
            grid=grid,
            in_specs=[
                pl.BlockSpec((tm_eff, in_size), lambda i: (i, 0)),  # x tile (pipelined)
                pl.BlockSpec(memory_space=vmem),                    # W1 resident, 1 copy
                pl.BlockSpec(memory_space=vmem),                    # b1
                pl.BlockSpec(memory_space=vmem),                    # W2 resident, 1 copy
                pl.BlockSpec(memory_space=vmem),                    # b2
            ],
            out_specs=pl.BlockSpec((tm_eff, out_p), lambda i: (i, 0)),
        ),
        compiler_params=pltpu.CompilerParams(**cp_kwargs),
        cost_estimate=cost,
    )(x2, w1, b1_2, w2, b2_2)

    return out[:M, :out_size].reshape(*lead, out_size)


def _ref(x, w1, b1, w2, b2):
    h = jnp.maximum(x @ w1 + b1, 0.0)
    return h @ w2 + b2


if __name__ == "__main__":
    # Small shapes consistent with the module's forward on the last dim.
    batch, seq = 2, 8
    in_size, mid_size, out_size = 32, 64, 16

    key = jax.random.PRNGKey(0)
    kx, kw1, kb1, kw2, kb2 = jax.random.split(key, 5)

    x = jax.random.normal(kx, (batch, seq, in_size), dtype=jnp.float32)

    # Deterministic init mimicking nn.Linear: U(-1/sqrt(fan_in), 1/sqrt(fan_in)).
    bound1 = 1.0 / (in_size ** 0.5)
    w1 = jax.random.uniform(kw1, (in_size, mid_size), jnp.float32, -bound1, bound1)
    b1 = jax.random.uniform(kb1, (mid_size,), jnp.float32, -bound1, bound1)
    bound2 = 1.0 / (mid_size ** 0.5)
    w2 = jax.random.uniform(kw2, (mid_size, out_size), jnp.float32, -bound2, bound2)
    b2 = jax.random.uniform(kb2, (out_size,), jnp.float32, -bound2, bound2)

    out = mlp_pallas(x, w1, b1, w2, b2)
    out = jax.block_until_ready(out)

    ref = _ref(x, w1, b1, w2, b2)
    assert out.shape == (batch, seq, out_size)
    assert jnp.allclose(out, ref, atol=1e-5, rtol=1e-5)

    # Exercise the ragged-M padding path (M = 15 not a multiple of the tile).
    x_r = jax.random.normal(kx, (3, 5, in_size), dtype=jnp.float32)
    out_r = jax.block_until_ready(mlp_pallas(x_r, w1, b1, w2, b2))
    assert jnp.allclose(out_r, _ref(x_r, w1, b1, w2, b2), atol=1e-5, rtol=1e-5)

    print("KERNEL_OK")
</pallas_src>

<mosaic_0001>
module attributes {stable_mosaic.version = 11 : i64} {
  func.func @mlp_kernel(%arg0: i32, %arg1: memref<16x32xf32, #tpu.memory_space<vmem>>, %arg2: memref<32x64xf32, #tpu.memory_space<vmem>>, %arg3: memref<1x64xf32, #tpu.memory_space<vmem>>, %arg4: memref<64x128xf32, #tpu.memory_space<vmem>>, %arg5: memref<1x128xf32, #tpu.memory_space<vmem>>, %arg6: memref<16x128xf32, #tpu.memory_space<vmem>>) attributes {dimension_semantics = [#tpu.dimension_semantics<parallel>], iteration_bounds = array<i64: 1>, scalar_prefetch = 0 : i64, scratch_operands = 0 : i64, tpu.core_type = #tpu.core_type<tc>, window_params = [{transform_indices = @transform_0, window_bounds = array<i64: 16, 32>}, {pipeline_mode = #tpu.pipeline_mode<synchronous>, transform_indices = @transform_1, window_bounds = array<i64: 32, 64>}, {pipeline_mode = #tpu.pipeline_mode<synchronous>, transform_indices = @transform_2, window_bounds = array<i64: 1, 64>}, {pipeline_mode = #tpu.pipeline_mode<synchronous>, transform_indices = @transform_3, window_bounds = array<i64: 64, 128>}, {pipeline_mode = #tpu.pipeline_mode<synchronous>, transform_indices = @transform_4, window_bounds = array<i64: 1, 128>}, {transform_indices = @transform_5, window_bounds = array<i64: 16, 128>}]} {
    %c0 = arith.constant 0 : index
    %c0_0 = arith.constant 0 : index
    %0 = vector.load %arg1[%c0, %c0_0] : memref<16x32xf32, #tpu.memory_space<vmem>>, vector<16x32xf32>
    %c0_1 = arith.constant 0 : index
    %c0_2 = arith.constant 0 : index
    %1 = vector.load %arg2[%c0_1, %c0_2] : memref<32x64xf32, #tpu.memory_space<vmem>>, vector<32x64xf32>
    %cst = arith.constant dense<0.000000e+00> : vector<16x64xf32>
    %2 = tpu.matmul %0, %1, %cst {dimension_numbers = #tpu.dot_dimension_numbers<[1], [0], [0], [1], [0, 0, 1, 1], [], []>} : vector<16x32xf32>, vector<32x64xf32>, vector<16x64xf32> -> vector<16x64xf32>
    %c0_3 = arith.constant 0 : index
    %c0_4 = arith.constant 0 : index
    %3 = vector.load %arg3[%c0_3, %c0_4] : memref<1x64xf32, #tpu.memory_space<vmem>>, vector<1x64xf32>
    %4 = vector.broadcast %3 : vector<1x64xf32> to vector<16x64xf32>
    %5 = arith.addf %2, %4 : vector<16x64xf32>
    %cst_5 = arith.constant 0.000000e+00 : f32
    %6 = vector.broadcast %cst_5 : f32 to vector<16x64xf32>
    %7 = arith.maximumf %5, %6 : vector<16x64xf32>
    %c0_6 = arith.constant 0 : index
    %c0_7 = arith.constant 0 : index
    %8 = vector.load %arg4[%c0_6, %c0_7] : memref<64x128xf32, #tpu.memory_space<vmem>>, vector<64x128xf32>
    %cst_8 = arith.constant dense<0.000000e+00> : vector<16x128xf32>
    %9 = tpu.matmul %7, %8, %cst_8 {dimension_numbers = #tpu.dot_dimension_numbers<[1], [0], [0], [1], [0, 0, 1, 1], [], []>} : vector<16x64xf32>, vector<64x128xf32>, vector<16x128xf32> -> vector<16x128xf32>
    %c0_9 = arith.constant 0 : index
    %c0_10 = arith.constant 0 : index
    %10 = vector.load %arg5[%c0_9, %c0_10] : memref<1x128xf32, #tpu.memory_space<vmem>>, vector<1x128xf32>
    %11 = vector.broadcast %10 : vector<1x128xf32> to vector<16x128xf32>
    %12 = arith.addf %9, %11 : vector<16x128xf32>
    %c0_11 = arith.constant 0 : index
    %c0_12 = arith.constant 0 : index
    %13 = vector.load %arg6[%c0_11, %c0_12] : memref<16x128xf32, #tpu.memory_space<vmem>>, vector<16x128xf32>
    tpu.vector_store %arg6[%c0_11, %c0_12], %12 {strides = array<i32>} : memref<16x128xf32, #tpu.memory_space<vmem>>, vector<16x128xf32>,
    return
  }
  func.func @transform_0(%arg0: i32) -> (i32, i32) {
    %c0_i32 = arith.constant 0 : i32
    %c0_i32_0 = arith.constant 0 : i32
    return %arg0, %c0_i32 : i32, i32
  }
  func.func @transform_1(%arg0: i32) -> (i32, i32) {
    %c0_i32 = arith.constant 0 : i32
    %c0_i32_0 = arith.constant 0 : i32
    %c0_i32_1 = arith.constant 0 : i32
    return %c0_i32, %c0_i32_0 : i32, i32
  }
  func.func @transform_2(%arg0: i32) -> (i32, i32) {
    %c0_i32 = arith.constant 0 : i32
    %c0_i32_0 = arith.constant 0 : i32
    %c0_i32_1 = arith.constant 0 : i32
    return %c0_i32, %c0_i32_0 : i32, i32
  }
  func.func @transform_3(%arg0: i32) -> (i32, i32) {
    %c0_i32 = arith.constant 0 : i32
    %c0_i32_0 = arith.constant 0 : i32
    %c0_i32_1 = arith.constant 0 : i32
    return %c0_i32, %c0_i32_0 : i32, i32
  }
  func.func @transform_4(%arg0: i32) -> (i32, i32) {
    %c0_i32 = arith.constant 0 : i32
    %c0_i32_0 = arith.constant 0 : i32
    %c0_i32_1 = arith.constant 0 : i32
    return %c0_i32, %c0_i32_0 : i32, i32
  }
  func.func @transform_5(%arg0: i32) -> (i32, i32) {
    %c0_i32 = arith.constant 0 : i32
    %c0_i32_0 = arith.constant 0 : i32
    return %arg0, %c0_i32 : i32, i32
  }
}

</mosaic_0001>

<bundles_post_ra>
// kernel: tpu_custom_call.1
= control target key start
LH: loop header
LB: loop body
LE: loop exit
PB: predicated region body
PF: predicated region fallthrough
CT: control target
= control target key end

     0   :  { %10 = vsyncpa [#allocation3], 0  ;;  %s366_s0 = inlined_call_operand.hbm [shape: f32[16,32], index: 0, kind: input, shape index: {}]   ;;  %s367_s1 = inlined_call_operand.hbm [shape: f32[32,64], index: 1, kind: input, shape index: {}]   ;;  %s368_s2 = inlined_call_operand.vmem [shape: f32[1,64], index: 2, kind: input, shape index: {}]   ;;  %s369_s3 = inlined_call_operand.hbm [shape: f32[64,128], index: 3, kind: input, shape index: {}]   ;;  %s370_s4 = inlined_call_operand.vmem [shape: f32[1,128], index: 4, kind: input, shape index: {}]   ;;  %s371_s5 = inlined_call_operand.hbm [shape: f32[16,128], index: 5, kind: output, shape index: {}]  }
   0x1   :  { %11 = vsyncpa [#allocation6], 0 }
   0x2   :  { %12 = vsyncpa [#allocation4], 0  ;;  %s30_s20 = sshll.u32 %s367_s1, 4  ;;  %s300_s21 = smov [#allocation5]   ;;  %s31_s20 = int_to_ptr.hbm [resolvable:$true] %s30_s20 }
   0x3   :  { %s32_s22 = sshll.u32 %s300_s21, 4  ;;  %s17_s25 = sshll.u32 %s366_s0, 4  ;;  %s33_s22 = int_to_ptr.vmem [resolvable:$true] %s32_s22  ;;  %s18_s25 = int_to_ptr.hbm [resolvable:$true] %s17_s25 }
   0x4   :  { %s301_s26 = smov 128   ;;  %s302_s27 = smov 8  }
   0x5   :  { %38 = dma.hbm_to_vmem [thread:$0]  %s31_s20, 512, %s33_s22, [#allocation6], %s301_s26, %s301_s26, %s302_s27  }
   0x6   :  { %s303_s28 = smov [#allocation2]   ;;  %s45_s1 = sshll.u32 %s369_s3, 4  ;;  %s46_s1 = int_to_ptr.hbm [resolvable:$true] %s45_s1 }
   0x7   :  { %s19_s29 = sshll.u32 %s303_s28, 4  ;;  %s304_s0 = smov [#allocation7]   ;;  %s20_s29 = int_to_ptr.vmem [resolvable:$true] %s19_s29 }
   0x8   :  { %25 = dma.hbm_to_vmem [thread:$0]  %s18_s25, 256, %s20_s29, [#allocation3], %s301_s26, %s301_s26, %s302_s27  }
   0x9   :  { %s47_s7 = sshll.u32 %s304_s0, 4  ;;  %s48_s7 = int_to_ptr.vmem [resolvable:$true] %s47_s7 }
   0xa   :  { %53 = dma.hbm_to_vmem [thread:$0]  %s46_s1, 1024, %s48_s7, [#allocation6], %s301_s26, %s301_s26, %s302_s27  }
   0xb   :  { %294 = dma.done.wait [#allocation3], 256  }
   0xc   :  { %295 = vsyncadd [#allocation3], 4294967040 }
   0xd   :  { %296 = dma.done.wait [#allocation6], 1536  }
   0xe   :  { %297 = vsyncadd [#allocation6], 4294965760  ;;  %v73_v0 = vld [vmem:[#allocation5 + $0x18] sm:$0xff]  ;;  %v72_v1 = vld [vmem:[#allocation5 + $0x10] sm:$0xff]  ;;  %vm78_vm0 = vcmask 261120   ;;  %vm122_vm1 = vcmask 523264  }
   0xf   :  { %178 = vmatpush.msra.mxu3 %v73_v0  ;;  %97 = vmatpush.msra.mxu0 %v73_v0  ;;  %v71_v2 = vld [vmem:[#allocation5 + $0x8] sm:$0xff]  ;;  %v117_v3 = vld [vmem:[#allocation7 + $0x38] sm:$0xff]  ;;  %v116_v4 = vld [vmem:[#allocation7 + $0x30] sm:$0xff]  ;;  %s305_s11 = smov [#allocation8]   ;;  %s160_s14 = sshll.u32 %s371_s5, 4  ;;  %s161_s14 = int_to_ptr.hbm [resolvable:$true] %s160_s14 }
  0x10   :  { %v70_v5 = vld [vmem:[#allocation5] sm:$0xff]  ;;  %182 = vmatpush.msra.mxu2 %v117_v3  ;;  %137 = vmatpush.msra.mxu1 %v117_v3  ;;  %v69_v6 = vld [vmem:[#allocation2 + $0x8] sm:$0xff]  ;;  %v68_v7 = vld [vmem:[#allocation2] sm:$0xff]  ;;  %s158_s12 = sshll.u32 %s305_s11, 4  ;;  %s159_s12 = int_to_ptr.vmem [resolvable:$true] %s158_s12 }
  0x11   :  { %179 = vmatpush.msra.mxu3 %v72_v1  ;;  %98 = vmatpush.msra.mxu0 %v72_v1  ;;  %v115_v8 = vld [vmem:[#allocation7 + $0x28] sm:$0xff]  ;;  %v114_v9 = vld [vmem:[#allocation7 + $0x20] sm:$0xff]  ;;  %v113_v10 = vld [vmem:[#allocation7 + $0x18] sm:$0xff] }
  0x12   :  { %183 = vmatpush.msra.mxu2 %v116_v4  ;;  %138 = vmatpush.msra.mxu1 %v116_v4  ;;  %v112_v11 = vld [vmem:[#allocation7 + $0x10] sm:$0xff]  ;;  %v111_v12 = vld [vmem:[#allocation7 + $0x8] sm:$0xff]  ;;  %v110_v13 = vld [vmem:[#allocation7] sm:$0xff] }
  0x13   :  { %180 = vmatpush.msra.mxu3 %v71_v2  ;;  %99 = vmatpush.msra.mxu0 %v71_v2  ;;  %v196_v14 = vld [vmem:[%s368_s2] ss:$0 sm:$0xff] }
  0x14   :  { %184 = vmatpush.msra.mxu2 %v115_v8  ;;  %139 = vmatpush.msra.mxu1 %v115_v8  ;;  %v197_v21 = vld [vmem:[%s370_s4] ss:$0 sm:$0xff] }
  0x15   :  { %181 = vmatpush.msra.mxu3 %v70_v5  ;;  %100 = vmatpush.msra.mxu0 %v70_v5 }
  0x16   :  { %175 = vmatmul.msk.f32.vlgmr.msra.gmra.mxu3 %vm78_vm0, %v69_v6  ;;  %174 = vmatmul.msk.f32.vlgmr.msra.gmra.mxu0 %vm78_vm0, %v68_v7 }
  0x17   :  { %185 = vmatpush.msra.mxu2 %v114_v9  ;;  %140 = vmatpush.msra.mxu1 %v114_v9 }
  0x19   :  { %186 = vmatpush.msra.mxu2 %v113_v10  ;;  %141 = vmatpush.msra.mxu1 %v113_v10 }
  0x1b   :  { %187 = vmatpush.msra.mxu2 %v112_v11  ;;  %142 = vmatpush.msra.mxu1 %v112_v11 }
  0x1d   :  { %188 = vmatpush.msra.mxu2 %v111_v12  ;;  %143 = vmatpush.msra.mxu1 %v111_v12 }
  0x1f   :  { %189 = vmatpush.msra.mxu2 %v110_v13  ;;  %144 = vmatpush.msra.mxu1 %v110_v13 }
  0x93   :  { %v102_v15 = vpop.f32.mrf.mxu0 }
  0x94   :  { %v103_v16 = vadd.f32 %v196_v14, %v102_v15 }
  0x96   :  { %v108_v17 = vmax.f32 %v103_v16, 0.0 }
  0x98   :  { %176 = vmatmul.msk.f32.vlgmr.msra.gmra.mxu1 %vm122_vm1, %v108_v17 }
  0x99   :  { %v105_v18 = vpop.f32.mrf.mxu3 }
  0x9a   :  { %v106_v19 = vadd.f32 %v196_v14, %v105_v18 }
  0x9c   :  { %v109_v20 = vmax.f32 %v106_v19, 0.0 }
  0x9e   :  { %177 = vmatmul.msk.f32.vlgmr.msra.gmra.mxu2 %vm122_vm1, %v109_v20 }
 0x115   :  { %v146_v22 = vpop.f32.mrf.mxu1 }
 0x116   :  { %v147_v23 = vadd.f32 %v197_v21, %v146_v22 }
 0x118   :  { %152 = vst [vmem:[#allocation8] sm:$0xff] %v147_v23 }
 0x121   :  { %v149_v24 = vpop.f32.mrf.mxu2 }
 0x122   :  { %v150_v25 = vadd.f32 %v197_v21, %v149_v24 }
 0x124   :  { %153 = vst [vmem:[#allocation8 + $0x8] sm:$0xff] %v150_v25 }
 0x125   :  { %166 = dma.vmem_to_hbm [thread:$0]  %s159_s12, 256, %s161_s14, [#allocation4], %s301_s26, %s301_s26, %s302_s27  }
 0x126   :  { %298 = dma.done.wait [#allocation4], 256  }
 0x127   :  { %299 = vsyncadd [#allocation4], 4294967040 }
 0x128   :  { %171 = vsyncpa [#allocation3], 1 }
 0x129   :  { %172 = vsyncpa [#allocation6], 1 }
 0x12a   :  { %173 = vsyncpa [#allocation4], 1 }

</bundles_post_ra>
